<compile_context>
chip_gen: v6e
topology: v6e:2x2x1
jax: 0.10.0
libtpu: 0.0.40
codegen_flags: <defaults>
</compile_context>

<pallas_src>
import math

import jax
import jax.numpy as jnp
from jax.experimental import pallas as pl
from jax.experimental.pallas import tpu as pltpu


def _round_up(x, n):
    return -(-x // n) * n


def _backbone_update_kernel(s_ref, w_ref, b_ref, out_ref):
    # s_ref: (TM, c_s) activation dtype; w_ref: (6, c_s) same dtype; b_ref: (6, 1) f32;
    # out_ref: (TM, 16) f32.
    tm = out_ref.shape[0]

    # Linear layer, transposed so every per-residue quantity is a lane-dense (1, TM)
    # row: (6, c_s) x (TM, c_s) contracting c_s -> (6, TM), f32 accumulation on the MXU.
    group_t = jax.lax.dot_general(
        w_ref[...], s_ref[...],
        dimension_numbers=(((1,), (1,)), ((), ())),
        preferred_element_type=jnp.float32,
    ) + b_ref[...]                                            # (6, TM) f32

    qb = group_t[0:1, :]
    qc = group_t[1:2, :]
    qd = group_t[2:3, :]
    tx = group_t[3:4, :]
    ty = group_t[4:5, :]
    tz = group_t[5:6, :]

    # quaternion = (1, qb, qc, qd), normalized; qa == 1 so qa*qa == 1.
    inv_norm = jax.lax.rsqrt(1.0 + qb * qb + qc * qc + qd * qd)   # EUP slot
    a = inv_norm
    b = qb * inv_norm
    c = qc * inv_norm
    d = qd * inv_norm

    aa = a * a; bb = b * b; cc = c * c; dd = d * d
    ab = a * b; ac = a * c; ad = a * d
    bc = b * c; bd = b * d; cd = c * d

    zero = jnp.zeros_like(a)
    one = jnp.ones_like(a)

    # Row-major flattened 4x4 transform, still transposed: (16, TM), lane-dense.
    rows = jnp.concatenate(
        [
            aa + bb - cc - dd, 2.0 * (bc - ad), 2.0 * (bd + ac), tx,
            2.0 * (bc + ad), aa - bb + cc - dd, 2.0 * (cd - ab), ty,
            2.0 * (bd - ac), 2.0 * (cd + ab), aa - bb - cc + dd, tz,
            zero, zero, zero, one,
        ],
        axis=0,
    )

    # Transpose (16, TM) -> (TM, 16) on the XLU (idle in this HBM-bound kernel) so the
    # HBM output block is row-major and the wrapper reshape is free. Chunk along lanes
    # to keep the transposed live value small (bounds vreg pressure / VMEM spills).
    odt = out_ref.dtype
    chunk = next(cw for cw in (512, 256, 128) if tm % cw == 0)
    for j in range(tm // chunk):
        sl = slice(j * chunk, (j + 1) * chunk)
        out_ref[sl, :] = jnp.transpose(rows[:, sl], (1, 0)).astype(odt)


def _pick_tm(m, c_s, itemsize):
    """Row-tile heuristic (amortize per-step overhead, fit VMEM, >=2 steps for v7x)."""
    lane = 128
    cs_pad = _round_up(c_s, lane)
    # Per-row VMEM cost, double-buffered: input tile (lane-padded c_s) + f32 output
    # tile whose 16-wide minor dim pads to 128 lanes in VMEM.
    vmem_per_row = 2 * (cs_pad * itemsize + lane * 4)
    # ~10 MiB keeps us comfortably under v5e's 16 MiB scoped-VMEM default
    # (32 MiB on v6e/v7x) without any compiler_params override.
    tm = min((10 * 1024 * 1024) // vmem_per_row, 8192)
    # At least 2 grid steps when there are enough rows, so ("parallel",) actually
    # shards the row axis across both TensorCores on v7x.
    tm = min(tm, _round_up(pl.cdiv(m, 2), lane))
    return max(lane, (tm // lane) * lane)


def backbone_update(s, weight, bias, *, tm=None):
    """BackboneUpdate forward.

    s: (..., c_s) activations (f32 or bf16); weight: (6, c_s); bias: (6,)
    returns T: (..., 4, 4) float32 rigid transforms.

    Note: weight is cast to s.dtype for the matmul (halves the HBM read for bf16
    activations; exact for f32 activations). tm must be a multiple of 128 if given.
    """
    lead = s.shape[:-1]
    c_s = s.shape[-1]
    m = math.prod(lead) if lead else 1

    s2d = s.reshape(m, c_s)
    w = weight.astype(s.dtype)                    # (6, c_s)
    b2d = bias.reshape(6, 1).astype(jnp.float32)  # (6, 1)

    if tm is None:
        tm = _pick_tm(m, c_s, s2d.dtype.itemsize)
    assert tm % 128 == 0, "tm must be a multiple of 128 (lane width)"

    # Ragged last block is handled by Pallas (padded reads, masked write-back), so
    # there is no jnp.pad copy of s and no slicing of the output.
    grid = (pl.cdiv(m, tm),)

    out = pl.pallas_call(
        _backbone_update_kernel,
        out_shape=jax.ShapeDtypeStruct((m, 16), jnp.float32),
        grid_spec=pltpu.PrefetchScalarGridSpec(
            num_scalar_prefetch=0,
            grid=grid,
            in_specs=[
                pl.BlockSpec((tm, c_s), lambda i: (i, 0)),   # s tile, double-buffered
                pl.BlockSpec((6, c_s), lambda i: (0, 0)),    # weight, resident
                pl.BlockSpec((6, 1), lambda i: (0, 0)),      # bias, resident
            ],
            out_specs=pl.BlockSpec((tm, 16), lambda i: (i, 0)),  # HBM-contiguous rows
        ),
        compiler_params=pltpu.CompilerParams(
            dimension_semantics=("parallel",),
        ),
    )(s2d, w, b2d)

    return out.reshape(lead + (4, 4))   # free: (m, 16) is already row-major


def _reference(s, weight, bias):
    """Pure-JAX reference for correctness checking."""
    group = jnp.einsum("...c,oc->...o", s.astype(jnp.float32),
                       weight.astype(jnp.float32)) + bias.astype(jnp.float32)
    quat = jnp.concatenate(
        [jnp.ones(group.shape[:-1] + (1,), group.dtype), group[..., :3]], axis=-1
    )
    quat = quat / jnp.linalg.norm(quat, axis=-1, keepdims=True)
    t = group[..., 3:]
    a, b, c, d = quat[..., 0], quat[..., 1], quat[..., 2], quat[..., 3]
    R = jnp.stack(
        [
            jnp.stack([a * a + b * b - c * c - d * d, 2 * (b * c - a * d), 2 * (b * d + a * c)], -1),
            jnp.stack([2 * (b * c + a * d), a * a - b * b + c * c - d * d, 2 * (c * d - a * b)], -1),
            jnp.stack([2 * (b * d - a * c), 2 * (c * d + a * b), a * a - b * b - c * c + d * d], -1),
        ],
        axis=-2,
    )
    top = jnp.concatenate([R, t[..., None]], axis=-1)                     # (..., 3, 4)
    bottom = jnp.zeros(top.shape[:-2] + (1, 4), top.dtype).at[..., 0, 3].set(1.0)
    return jnp.concatenate([top, bottom], axis=-2)


if __name__ == "__main__":
    c_s = 32
    key = jax.random.PRNGKey(0)
    k_s, k_w, k_b, k_s2 = jax.random.split(key, 4)

    # Deterministic nn.Linear(c_s, 6)-style init: uniform(-1/sqrt(c_s), 1/sqrt(c_s)).
    bound = 1.0 / (c_s ** 0.5)
    weight = jax.random.uniform(k_w, (6, c_s), jnp.float32, -bound, bound)
    bias = jax.random.uniform(k_b, (6,), jnp.float32, -bound, bound)

    # Case 1: small canonical shape -> single (ragged) grid step, masked write-back.
    B, N_res = 2, 8
    s = jax.random.normal(k_s, (B, N_res, c_s), dtype=jnp.float32)
    T = jax.block_until_ready(backbone_update(s, weight, bias))
    T_ref = _reference(s, weight, bias)
    assert T.shape == (B, N_res, 4, 4)
    assert jnp.allclose(T, T_ref, atol=1e-4, rtol=1e-4), \
        float(jnp.max(jnp.abs(T - T_ref)))

    # Case 2: heuristic tm -> multi-step grid with a ragged tail
    # (M=400 -> tm=256, 2 grid steps, last block has 144/256 valid rows).
    B2, N2 = 2, 200
    s2 = jax.random.normal(k_s2, (B2, N2, c_s), dtype=jnp.float32)
    T2 = jax.block_until_ready(backbone_update(s2, weight, bias))
    T2_ref = _reference(s2, weight, bias)
    assert T2.shape == (B2, N2, 4, 4)
    assert jnp.allclose(T2, T2_ref, atol=1e-4, rtol=1e-4), \
        float(jnp.max(jnp.abs(T2 - T2_ref)))

    # Case 3: explicit tm override (4 grid steps, 128-lane transpose chunks).
    T3 = jax.block_until_ready(backbone_update(s2, weight, bias, tm=128))
    assert jnp.allclose(T3, T2_ref, atol=1e-4, rtol=1e-4)

    print("KERNEL_OK")
</pallas_src>

<mosaic_0001>
module attributes {stable_mosaic.version = 11 : i64} {
  func.func @_backbone_update_kernel(%arg0: i32, %arg1: memref<128x32xf32, #tpu.memory_space<vmem>>, %arg2: memref<6x32xf32, #tpu.memory_space<vmem>>, %arg3: memref<6x1xf32, #tpu.memory_space<vmem>>, %arg4: memref<128x16xf32, #tpu.memory_space<vmem>>) attributes {dimension_semantics = [#tpu.dimension_semantics<parallel>], iteration_bounds = array<i64: 1>, scalar_prefetch = 0 : i64, scratch_operands = 0 : i64, tpu.core_type = #tpu.core_type<tc>, window_params = [{transform_indices = @transform_0, window_bounds = array<i64: 128, 32>}, {pipeline_mode = #tpu.pipeline_mode<synchronous>, transform_indices = @transform_1, window_bounds = array<i64: 6, 32>}, {pipeline_mode = #tpu.pipeline_mode<synchronous>, transform_indices = @transform_2, window_bounds = array<i64: 6, 1>}, {transform_indices = @transform_3, window_bounds = array<i64: 128, 16>}]} {
    %c0 = arith.constant 0 : index
    %c0_0 = arith.constant 0 : index
    %0 = vector.load %arg2[%c0, %c0_0] : memref<6x32xf32, #tpu.memory_space<vmem>>, vector<6x32xf32>
    %c0_1 = arith.constant 0 : index
    %c0_2 = arith.constant 0 : index
    %1 = vector.load %arg1[%c0_1, %c0_2] : memref<128x32xf32, #tpu.memory_space<vmem>>, vector<128x32xf32>
    %cst = arith.constant dense<0.000000e+00> : vector<6x128xf32>
    %2 = tpu.matmul %0, %1, %cst {dimension_numbers = #tpu.dot_dimension_numbers<[1], [1], [0], [0], [0, 0, 1, 0], [], []>} : vector<6x32xf32>, vector<128x32xf32>, vector<6x128xf32> -> vector<6x128xf32>
    %c0_3 = arith.constant 0 : index
    %c0_4 = arith.constant 0 : index
    %3 = vector.load %arg3[%c0_3, %c0_4] : memref<6x1xf32, #tpu.memory_space<vmem>>, vector<6x1xf32>
    %4 = vector.broadcast %3 : vector<6x1xf32> to vector<6x128xf32>
    %5 = arith.addf %2, %4 : vector<6x128xf32>
    %6 = vector.extract_strided_slice %5 {offsets = [0, 0], sizes = [1, 128], strides = [1, 1]} : vector<6x128xf32> to vector<1x128xf32>
    %7 = vector.extract_strided_slice %5 {offsets = [1, 0], sizes = [1, 128], strides = [1, 1]} : vector<6x128xf32> to vector<1x128xf32>
    %8 = vector.extract_strided_slice %5 {offsets = [2, 0], sizes = [1, 128], strides = [1, 1]} : vector<6x128xf32> to vector<1x128xf32>
    %9 = vector.extract_strided_slice %5 {offsets = [3, 0], sizes = [1, 128], strides = [1, 1]} : vector<6x128xf32> to vector<1x128xf32>
    %10 = vector.extract_strided_slice %5 {offsets = [4, 0], sizes = [1, 128], strides = [1, 1]} : vector<6x128xf32> to vector<1x128xf32>
    %11 = vector.extract_strided_slice %5 {offsets = [5, 0], sizes = [1, 128], strides = [1, 1]} : vector<6x128xf32> to vector<1x128xf32>
    %12 = arith.mulf %6, %6 : vector<1x128xf32>
    %cst_5 = arith.constant 1.000000e+00 : f32
    %13 = vector.broadcast %cst_5 : f32 to vector<1x128xf32>
    %14 = arith.addf %13, %12 : vector<1x128xf32>
    %15 = arith.mulf %7, %7 : vector<1x128xf32>
    %16 = arith.addf %14, %15 : vector<1x128xf32>
    %17 = arith.mulf %8, %8 : vector<1x128xf32>
    %18 = arith.addf %16, %17 : vector<1x128xf32>
    %19 = math.rsqrt %18 : vector<1x128xf32>
    %20 = arith.mulf %6, %19 : vector<1x128xf32>
    %21 = arith.mulf %7, %19 : vector<1x128xf32>
    %22 = arith.mulf %8, %19 : vector<1x128xf32>
    %23 = arith.mulf %19, %19 : vector<1x128xf32>
    %24 = arith.mulf %20, %20 : vector<1x128xf32>
    %25 = arith.mulf %21, %21 : vector<1x128xf32>
    %26 = arith.mulf %22, %22 : vector<1x128xf32>
    %27 = arith.mulf %19, %20 : vector<1x128xf32>
    %28 = arith.mulf %19, %21 : vector<1x128xf32>
    %29 = arith.mulf %19, %22 : vector<1x128xf32>
    %30 = arith.mulf %20, %21 : vector<1x128xf32>
    %31 = arith.mulf %20, %22 : vector<1x128xf32>
    %32 = arith.mulf %21, %22 : vector<1x128xf32>
    %cst_6 = arith.constant 0.000000e+00 : f32
    %33 = vector.broadcast %cst_6 : f32 to vector<1x128xf32>
    %cst_7 = arith.constant 1.000000e+00 : f32
    %34 = vector.broadcast %cst_7 : f32 to vector<1x128xf32>
    %35 = arith.addf %23, %24 : vector<1x128xf32>
    %36 = arith.subf %35, %25 : vector<1x128xf32>
    %37 = arith.subf %36, %26 : vector<1x128xf32>
    %38 = arith.subf %30, %29 : vector<1x128xf32>
    %cst_8 = arith.constant 2.000000e+00 : f32
    %39 = vector.broadcast %cst_8 : f32 to vector<1x128xf32>
    %40 = arith.mulf %39, %38 : vector<1x128xf32>
    %41 = arith.addf %31, %28 : vector<1x128xf32>
    %cst_9 = arith.constant 2.000000e+00 : f32
    %42 = vector.broadcast %cst_9 : f32 to vector<1x128xf32>
    %43 = arith.mulf %42, %41 : vector<1x128xf32>
    %44 = arith.addf %30, %29 : vector<1x128xf32>
    %cst_10 = arith.constant 2.000000e+00 : f32
    %45 = vector.broadcast %cst_10 : f32 to vector<1x128xf32>
    %46 = arith.mulf %45, %44 : vector<1x128xf32>
    %47 = arith.subf %23, %24 : vector<1x128xf32>
    %48 = arith.addf %47, %25 : vector<1x128xf32>
    %49 = arith.subf %48, %26 : vector<1x128xf32>
    %50 = arith.subf %32, %27 : vector<1x128xf32>
    %cst_11 = arith.constant 2.000000e+00 : f32
    %51 = vector.broadcast %cst_11 : f32 to vector<1x128xf32>
    %52 = arith.mulf %51, %50 : vector<1x128xf32>
    %53 = arith.subf %31, %28 : vector<1x128xf32>
    %cst_12 = arith.constant 2.000000e+00 : f32
    %54 = vector.broadcast %cst_12 : f32 to vector<1x128xf32>
    %55 = arith.mulf %54, %53 : vector<1x128xf32>
    %56 = arith.addf %32, %27 : vector<1x128xf32>
    %cst_13 = arith.constant 2.000000e+00 : f32
    %57 = vector.broadcast %cst_13 : f32 to vector<1x128xf32>
    %58 = arith.mulf %57, %56 : vector<1x128xf32>
    %59 = arith.subf %23, %24 : vector<1x128xf32>
    %60 = arith.subf %59, %25 : vector<1x128xf32>
    %61 = arith.addf %60, %26 : vector<1x128xf32>
    %62 = tpu.concatenate %37, %40, %43, %9, %46, %49, %52, %10, %55, %58, %61, %11, %33, %33, %33, %34 in 0 : vector<1x128xf32>, vector<1x128xf32>, vector<1x128xf32>, vector<1x128xf32>, vector<1x128xf32>, vector<1x128xf32>, vector<1x128xf32>, vector<1x128xf32>, vector<1x128xf32>, vector<1x128xf32>, vector<1x128xf32>, vector<1x128xf32>, vector<1x128xf32>, vector<1x128xf32>, vector<1x128xf32>, vector<1x128xf32> -> vector<16x128xf32>
    %63 = tpu.transpose %62, [1, 0] : vector<16x128xf32> -> vector<128x16xf32>
    %c0_14 = arith.constant 0 : index
    %c0_15 = arith.constant 0 : index
    %64 = vector.load %arg4[%c0_14, %c0_15] : memref<128x16xf32, #tpu.memory_space<vmem>>, vector<128x16xf32>
    tpu.vector_store %arg4[%c0_14, %c0_15], %63 {strides = array<i32>} : memref<128x16xf32, #tpu.memory_space<vmem>>, vector<128x16xf32>,
    return
  }
  func.func @transform_0(%arg0: i32) -> (i32, i32) {
    %c0_i32 = arith.constant 0 : i32
    %c0_i32_0 = arith.constant 0 : i32
    return %arg0, %c0_i32 : i32, i32
  }
  func.func @transform_1(%arg0: i32) -> (i32, i32) {
    %c0_i32 = arith.constant 0 : i32
    %c0_i32_0 = arith.constant 0 : i32
    %c0_i32_1 = arith.constant 0 : i32
    return %c0_i32, %c0_i32_0 : i32, i32
  }
  func.func @transform_2(%arg0: i32) -> (i32, i32) {
    %c0_i32 = arith.constant 0 : i32
    %c0_i32_0 = arith.constant 0 : i32
    %c0_i32_1 = arith.constant 0 : i32
    return %c0_i32, %c0_i32_0 : i32, i32
  }
  func.func @transform_3(%arg0: i32) -> (i32, i32) {
    %c0_i32 = arith.constant 0 : i32
    %c0_i32_0 = arith.constant 0 : i32
    return %arg0, %c0_i32 : i32, i32
  }
}

</mosaic_0001>

<bundles_post_ra>
// kernel: tpu_custom_call.1
= control target key start
LH: loop header
LB: loop body
LE: loop exit
PB: predicated region body
PF: predicated region fallthrough
CT: control target
= control target key end

     0   :  { %8 = vsyncpa [#allocation3], 0  ;;  %s570_s0 = inlined_call_operand.hbm [shape: f32[16,32], index: 0, kind: input, shape index: {}]   ;;  %s571_s1 = inlined_call_operand.vmem [shape: f32[6,32], index: 1, kind: input, shape index: {}]   ;;  %s572_s2 = inlined_call_operand.vmem [shape: f32[6,1], index: 2, kind: input, shape index: {}]   ;;  %s573_s3 = inlined_call_operand.hbm [shape: f32[16,16], index: 3, kind: output, shape index: {}]  }
   0x1   :  { %9 = vsyncpa [#allocation4], 0 }
   0x2   :  { %14 = vsyncadd [#allocation3], 1792  ;;  %s472_s12 = smov [#allocation2]  }
   0x3   :  { %s15_s13 = sshll.u32 %s472_s12, 4  ;;  %s16_s13 = int_to_ptr.vmem [resolvable:$true] %s15_s13 }
   0x4   :  { %s436_s14 = scalar_lea.vmem %s16_s13, 256  ;;  %s440_s15 = scalar_lea.vmem %s16_s13, 2048 }
   0x5   :  { %p437_p0 = scmp.ne.s32.totalorder %s16_s13, %s436_s14  ;;  %p441_p1 = scmp.lt.s32.totalorder %s16_s13, %s16_s13 }
   0x6   :  { %p442_p2 = scmp.lt.s32.totalorder %s440_s15, %s436_s14 }
   0x8   :  { %p443_p3 = por %p442_p2, %p441_p1 }
   0xa   :  { %p444_p4 = pnand %p443_p3, %p437_p0 }
   0xc   :  { %447 = shalt.err (!%p444_p4)
}
   0xd   :  { %s473_s16 = smov 128   ;;  %s474_s17 = smov 8  }
   0xe   :  { %21 = dma.hbm_to_vmem [thread:$0]  %s570_s0, 256, %s16_s13, [#allocation3], %s473_s16, %s473_s16, %s474_s17  }
   0xf   :  { %468 = dma.done.wait [#allocation3], 2048  }
  0x10   :  { %469 = vsyncadd [#allocation3], 4294965248  ;;  %v475_v0 = vmov 0.0   ;;  %vm476_vm0 = vmmov 0   ;;  %v477_v1 = vmov 0   ;;  %vm52_vm1 = vcmask 261120  }
  0x11   :  { %383 = vmatprep.subr.mxu0 %v475_v0  ;;  %415 = vmatprep.mubr.msk.f32.mxu0 %vm476_vm0, %v475_v0  ;;  %v45_v2 = vld [vmem:[#allocation2 + $0x78] sm:$0xff]  ;;  %v44_v3 = vld [vmem:[#allocation2 + $0x70] sm:$0xff]  ;;  %v46_v4 = vld [vmem:[%s572_s2] sm:$0x3f]  ;;  %vm262_vm2 = vcmask 1040384   ;;  %vm264_vm3 = vcmask 1041408  }
  0x12   :  { %425 = vset.pattern.permute.xlu0 %v477_v1  ;;  %384 = vmatpush3.xpose.msk.msra.mxu0 %vm52_vm1, %v45_v2  ;;  %v43_v5 = vld [vmem:[#allocation2 + $0x68] sm:$0xff]  ;;  %v42_v6 = vld [vmem:[#allocation2 + $0x60] sm:$0xff]  ;;  %v41_v7 = vld [vmem:[#allocation2 + $0x58] sm:$0xff]  ;;  %vm266_vm4 = vcmask 1042432   ;;  %vm268_vm5 = vcmask 1043456   ;;  %vm270_vm6 = vcmask 1044480  }
  0x13   :  { %385 = vmatprep.subr.mxu0 %v475_v0  ;;  %49 = vperm.xlu0 %425, %v46_v4   ;;  %v40_v8 = vld [vmem:[#allocation2 + $0x50] sm:$0xff]  ;;  %v39_v9 = vld [vmem:[#allocation2 + $0x48] sm:$0xff]  ;;  %v38_v10 = vld [vmem:[#allocation2 + $0x40] sm:$0xff]  ;;  %vm272_vm7 = vcmask 1045504   ;;  %vm274_vm8 = vcmask 1046528   ;;  %vm315_vm9 = vcmask 130048  }
  0x14   :  { %v37_v11 = vld [vmem:[#allocation2 + $0x38] sm:$0xff]  ;;  %v36_v12 = vld [vmem:[#allocation2 + $0x30] sm:$0xff]  ;;  %v35_v13 = vld [vmem:[#allocation2 + $0x28] sm:$0xff] }
  0x15   :  { %v34_v14 = vld [vmem:[#allocation2 + $0x20] sm:$0xff]  ;;  %v33_v15 = vld [vmem:[#allocation2 + $0x18] sm:$0xff]  ;;  %v32_v16 = vld [vmem:[#allocation2 + $0x10] sm:$0xff] }
  0x16   :  { %386 = vmatpush3.xpose.msk.msra.mxu0 %vm52_vm1, %v44_v3  ;;  %v31_v17 = vld [vmem:[#allocation2 + $0x8] sm:$0xff]  ;;  %v30_v18 = vld [vmem:[#allocation2] sm:$0xff] }
  0x17   :  { %387 = vmatprep.subr.mxu0 %v475_v0  ;;  %v29_v19 = vld [vmem:[%s571_s1] sm:$0x3f] }
  0x1a   :  { %388 = vmatpush3.xpose.msk.msra.mxu0 %vm52_vm1, %v43_v5 }
  0x1b   :  { %389 = vmatprep.subr.mxu0 %v475_v0 }
  0x1e   :  { %390 = vmatpush3.xpose.msk.msra.mxu0 %vm52_vm1, %v42_v6 }
  0x1f   :  { %391 = vmatprep.subr.mxu0 %v475_v0 }
  0x22   :  { %392 = vmatpush3.xpose.msk.msra.mxu0 %vm52_vm1, %v41_v7 }
  0x23   :  { %393 = vmatprep.subr.mxu0 %v475_v0 }
  0x26   :  { %394 = vmatpush3.xpose.msk.msra.mxu0 %vm52_vm1, %v40_v8 }
  0x27   :  { %395 = vmatprep.subr.mxu0 %v475_v0 }
  0x2a   :  { %396 = vmatpush3.xpose.msk.msra.mxu0 %vm52_vm1, %v39_v9 }
  0x2b   :  { %397 = vmatprep.subr.mxu0 %v475_v0 }
  0x2e   :  { %398 = vmatpush3.xpose.msk.msra.mxu0 %vm52_vm1, %v38_v10 }
  0x2f   :  { %399 = vmatprep.subr.mxu0 %v475_v0 }
  0x32   :  { %400 = vmatpush3.xpose.msk.msra.mxu0 %vm52_vm1, %v37_v11 }
  0x33   :  { %401 = vmatprep.subr.mxu0 %v475_v0 }
  0x36   :  { %402 = vmatpush3.xpose.msk.msra.mxu0 %vm52_vm1, %v36_v12 }
  0x37   :  { %403 = vmatprep.subr.mxu0 %v475_v0 }
  0x3a   :  { %404 = vmatpush3.xpose.msk.msra.mxu0 %vm52_vm1, %v35_v13 }
  0x3b   :  { %405 = vmatprep.subr.mxu0 %v475_v0 }
  0x3e   :  { %406 = vmatpush3.xpose.msk.msra.mxu0 %vm52_vm1, %v34_v14 }
  0x3f   :  { %407 = vmatprep.subr.mxu0 %v475_v0 }
  0x42   :  { %408 = vmatpush3.xpose.msk.msra.mxu0 %vm52_vm1, %v33_v15 }
  0x43   :  { %409 = vmatprep.subr.mxu0 %v475_v0 }
  0x46   :  { %410 = vmatpush3.xpose.msk.msra.mxu0 %vm52_vm1, %v32_v16 }
  0x47   :  { %411 = vmatprep.subr.mxu0 %v475_v0 }
  0x4a   :  { %412 = vmatpush3.xpose.msk.msra.mxu0 %vm52_vm1, %v31_v17 }
  0x4b   :  { %413 = vmatprep.subr.mxu0 %v475_v0 }
  0x4e   :  { %414 = vmatpush3.xpose.msk.msra.mxu0 %vm52_vm1, %v30_v18 }
  0x51   :  { %416 = vmatmul.mubr.msk.f32.vlgmr.msra.gmra.mxu0 %vm52_vm1, %v29_v19 }
  0x8e   :  { %v50_v20 = vpop.permute.xlu0 %49 }
 0x111   :  { %v170_v21 = vpop.f32.mrf.mxu0 }
 0x112   :  { %v528_v22 = vadd.f32 %v170_v21, %v50_v20 }
 0x113   :  { %v417_v23 = vpop.f32.mrf.mxu0 }
 0x114   :  { %v174_v24 = vmul.f32 %v528_v22, %v528_v22  ;;  %v260_v19 = vrot.slane %v528_v22, 2  ;;  %v255_v20 = vrot.slane %v528_v22, 5 }
 0x116   :  { %v175_v25 = vadd.f32 1.0, %v174_v24  ;;  %v177_v26 = vrot.slane %v174_v24, 1  ;;  %v180_v28 = vrot.slane %v174_v24, 2 }
 0x118   :  { %v179_v27 = vadd.f32 %v177_v26, %v175_v25 }
 0x11a   :  { %v182_v29 = vadd.f32 %v180_v28, %v179_v27 }
 0x11c   :  { %426 = vrsqrt.f32 %v182_v29 }
 0x129   :  { %v427_v30 = vpop.eup %426 }
 0x12a   :  { %v184_v31 = vmul.f32 %v427_v30, %v528_v22  ;;  %v186_v32 = vrot.slane %v427_v30, 7  ;;  %v189_v33 = vrot.slane %v427_v30, 6  ;;  %v192_v37 = vmul.f32 %v427_v30, %v427_v30 }
 0x12c   :  { %v188_v34 = vmul.f32 %v186_v32, %v528_v22  ;;  %v191_v35 = vmul.f32 %v189_v33, %v528_v22  ;;  %v193_v36 = vmul.f32 %v184_v31, %v184_v31  ;;  %v196_v38 = vmul.f32 %v427_v30, %v184_v31 }
 0x12e   :  { %v194_v39 = vmul.f32 %v188_v34, %v188_v34  ;;  %v195_v40 = vmul.f32 %v191_v35, %v191_v35  ;;  %v198_v41 = vrot.slane %v188_v34, 1  ;;  %v202_v42 = vrot.slane %v191_v35, 2 }
 0x12f   :  { %v207_v43 = vrot.slane %v191_v35, 1  ;;  %v210_v44 = vadd.f32 %v193_v36, %v192_v37  ;;  %v225_v45 = vsub.f32 %v192_v37, %v193_v36  ;;  %v229_v53 = vrot.slane %v196_v38, 7 }
 0x130   :  { %v200_v46 = vmul.f32 %v427_v30, %v198_v41  ;;  %v204_v47 = vmul.f32 %v427_v30, %v202_v42  ;;  %v205_v48 = vmul.f32 %v198_v41, %v184_v31  ;;  %v206_v49 = vmul.f32 %v202_v42, %v184_v31 }
 0x131   :  { %v209_v50 = vmul.f32 %v207_v43, %v188_v34  ;;  %v212_v51 = vrot.slane %v194_v39, 1  ;;  %v216_v52 = vrot.slane %v195_v40, 2 }
 0x132   :  { %v219_v54 = vsub.f32 %v205_v48, %v204_v47  ;;  %v221_v55 = vadd.f32 %v206_v49, %v200_v46  ;;  %v223_v56 = vadd.f32 %v205_v48, %v204_v47  ;;  %v233_v57 = vsub.f32 %v206_v49, %v200_v46 }
 0x133   :  { %v214_v58 = vsub.f32 %v210_v44, %v212_v51  ;;  %v226_v59 = vadd.f32 %v225_v45, %v212_v51  ;;  %v231_v60 = vsub.f32 %v209_v50, %v229_v53  ;;  %v235_v61 = vadd.f32 %v229_v53, %v209_v50 }
 0x134   :  { %v220_v62 = vmul.f32 2.0, %v219_v54  ;;  %v222_v63 = vmul.f32 2.0, %v221_v55  ;;  %v224_v1 = vmul.f32 2.0, %v223_v56  ;;  %v234_v3 = vmul.f32 2.0, %v233_v57 }
 0x135   :  { %v218_v0 = vsub.f32 %v214_v58, %v216_v52  ;;  %v236_v2 = vmul.f32 2.0, %v235_v61  ;;  %v227_v4 = vsub.f32 %v226_v59, %v216_v52  ;;  %v237_v7 = vsub.f32 %v225_v45, %v212_v51 }
 0x136   :  { %v240_v5 = vrot.slane %v220_v62, 7  ;;  %v243_v6 = vrot.slane %v222_v63, 6  ;;  %v232_v8 = vmul.f32 2.0, %v231_v60  ;;  %v246_v11 = vrot.slane %v224_v1, 4 }
 0x137   :  { %v238_v10 = vadd.f32 %v237_v7, %v216_v52  ;;  %v276_v13 = vsel %vm262_vm2, %v234_v3, %v236_v2  ;;  %v249_v14 = vrot.slane %v227_v4, 3 }
 0x138   :  { %v263_v9 = vsel %vm262_vm2, %v218_v0, %v240_v5  ;;  %v252_v17 = vrot.slane %v232_v8, 3 }
 0x139   :  { %v265_v12 = vsel %vm264_vm3, %v263_v9, %v243_v6  ;;  %v258_v16 = vrot.slane %v238_v10, 6 }
 0x13a   :  { %v267_v15 = vsel %vm266_vm4, %v265_v12, %v528_v22 }
 0x13b   :  { %v269_v18 = vsel %vm268_vm5, %v267_v15, %v246_v11  ;;  %v277_v23 = vsel %vm264_vm3, %v276_v13, %v258_v16 }
 0x13c   :  { %v271_v21 = vsel %vm270_vm6, %v269_v18, %v249_v14  ;;  %v278_v25 = vsel %vm266_vm4, %v277_v23, %v260_v19 }
 0x13d   :  { %v273_v24 = vsel %vm272_vm7, %v271_v21, %v252_v17  ;;  %v279_v27 = vsel %vm268_vm5, %v278_v25, 0.0 }
 0x13e   :  { %v275_v26 = vsel %vm274_vm8, %v273_v24, %v255_v20  ;;  %v280_v28 = vsel %vm270_vm6, %v279_v27, 0.0 }
 0x13f   :  { %283 = vxpose.xlu0.b32.start [1/2] (short) %v275_v26, 128  ;;  %v281_v29 = vsel %vm272_vm7, %v280_v28, 0.0 }
 0x140   :  { %v282_v30 = vsel %vm274_vm8, %v281_v29, 1.0 }
 0x143   :  { %284 = vxpose.xlu0.b32.end [2/2] (short) %v282_v30, 128 }
 0x1bb   :  { %v299_v31 = vpop.trf.xlu0 }
 0x1bc   :  { %316 = vst.msk [vmem:[#allocation5] sm:$0xff] %vm315_vm9, %v299_v31 }
 0x1bf   :  { %v300_v22 = vpop.trf.xlu0 }
 0x1c0   :  { %317 = vst.msk [vmem:[#allocation5 + $0x8] sm:$0xff] %vm315_vm9, %v300_v22 }
 0x1c3   :  { %v301_v32 = vpop.trf.xlu0 }
 0x1c4   :  { %318 = vst.msk [vmem:[#allocation5 + $0x10] sm:$0xff] %vm315_vm9, %v301_v32 }
 0x1c7   :  { %v302_v33 = vpop.trf.xlu0 }
 0x1c8   :  { %319 = vst.msk [vmem:[#allocation5 + $0x18] sm:$0xff] %vm315_vm9, %v302_v33 }
 0x1cb   :  { %v303_v34 = vpop.trf.xlu0 }
 0x1cc   :  { %320 = vst.msk [vmem:[#allocation5 + $0x20] sm:$0xff] %vm315_vm9, %v303_v34 }
 0x1cf   :  { %v304_v35 = vpop.trf.xlu0 }
 0x1d0   :  { %321 = vst.msk [vmem:[#allocation5 + $0x28] sm:$0xff] %vm315_vm9, %v304_v35 }
 0x1d3   :  { %v305_v36 = vpop.trf.xlu0 }
 0x1d4   :  { %322 = vst.msk [vmem:[#allocation5 + $0x30] sm:$0xff] %vm315_vm9, %v305_v36 }
 0x1d7   :  { %v306_v37 = vpop.trf.xlu0 }
 0x1d8   :  { %323 = vst.msk [vmem:[#allocation5 + $0x38] sm:$0xff] %vm315_vm9, %v306_v37 }
 0x1db   :  { %v307_v38 = vpop.trf.xlu0 }
 0x1dc   :  { %324 = vst.msk [vmem:[#allocation5 + $0x40] sm:$0xff] %vm315_vm9, %v307_v38 }
 0x1df   :  { %v308_v39 = vpop.trf.xlu0 }
 0x1e0   :  { %325 = vst.msk [vmem:[#allocation5 + $0x48] sm:$0xff] %vm315_vm9, %v308_v39 }
 0x1e3   :  { %v309_v40 = vpop.trf.xlu0 }
 0x1e4   :  { %326 = vst.msk [vmem:[#allocation5 + $0x50] sm:$0xff] %vm315_vm9, %v309_v40 }
 0x1e7   :  { %v310_v41 = vpop.trf.xlu0 }
 0x1e8   :  { %327 = vst.msk [vmem:[#allocation5 + $0x58] sm:$0xff] %vm315_vm9, %v310_v41 }
 0x1eb   :  { %v311_v42 = vpop.trf.xlu0 }
 0x1ec   :  { %328 = vst.msk [vmem:[#allocation5 + $0x60] sm:$0xff] %vm315_vm9, %v311_v42 }
 0x1ef   :  { %v312_v43 = vpop.trf.xlu0 }
 0x1f0   :  { %329 = vst.msk [vmem:[#allocation5 + $0x68] sm:$0xff] %vm315_vm9, %v312_v43 }
 0x1f3   :  { %v313_v44 = vpop.trf.xlu0 }
 0x1f4   :  { %330 = vst.msk [vmem:[#allocation5 + $0x70] sm:$0xff] %vm315_vm9, %v313_v44 }
 0x1f7   :  { %v314_v45 = vpop.trf.xlu0 }
 0x1f8   :  { %331 = vst.msk [vmem:[#allocation5 + $0x78] sm:$0xff] %vm315_vm9, %v314_v45 }
 0x1f9   :  { %336 = vsyncadd [#allocation4], 1792  ;;  %s478_s1 = smov [#allocation5]  }
 0x1fa   :  { %s337_s22 = sshll.u32 %s478_s1, 4  ;;  %s338_s22 = int_to_ptr.vmem [resolvable:$true] %s337_s22 }
 0x1fb   :  { %s448_s23 = scalar_lea.vmem %s338_s22, 256  ;;  %s452_s24 = scalar_lea.vmem %s338_s22, 2048 }
 0x1fc   :  { %p449_p5 = scmp.ne.s32.totalorder %s338_s22, %s448_s23  ;;  %p453_p6 = scmp.lt.s32.totalorder %s338_s22, %s338_s22 }
 0x1fd   :  { %p454_p7 = scmp.lt.s32.totalorder %s452_s24, %s448_s23 }
 0x1ff   :  { %p455_p8 = por %p454_p7, %p453_p6 }
 0x201   :  { %p456_p9 = pnand %p455_p8, %p449_p5 }
 0x203   :  { %459 = shalt.err (!%p456_p9)
}
 0x204   :  { %343 = dma.vmem_to_hbm [thread:$0]  %s338_s22, 256, %s573_s3, [#allocation4], %s473_s16, %s473_s16, %s474_s17  }
 0x205   :  { %470 = dma.done.wait [#allocation4], 2048  }
 0x206   :  { %471 = vsyncadd [#allocation4], 4294965248 }
 0x207   :  { %347 = vsyncpa [#allocation3], 1 }
 0x208   :  { %348 = vsyncpa [#allocation4], 1 }

</bundles_post_ra>
